<compile_context>
chip_gen: v6e
topology: v6e:2x2x1
jax: 0.10.0
libtpu: 0.0.40
codegen_flags: <defaults>
</compile_context>

<pallas_src>
import functools

import jax
import jax.numpy as jnp
from jax import lax
from jax.experimental import pallas as pl
from jax.experimental.pallas import tpu as pltpu

_LANE = 128
_ROW_CAP = 256                      # max (sub-)rows per block
_BLOCK_BUDGET = 2 * 1024 * 1024     # bytes per input block, in streamed dtype


def _dice_kernel(pred_ref, targ_ref, num_ref, pw_ref, *, p, tile_d,
                 k_per_split, d_valid, needs_mask):
    """pred_ref/targ_ref: (row_tile, tile_d) blocks in native dtype.
    num_ref: (row_tile, 1) f32 accumulator, sum(pred*targ).
    pw_ref : (row_tile, 1) f32 accumulator,
             p==2: sum((pred+targ)^2); p==1: sum(pred+targ);
             else: sum(pred^p + targ^p)."""
    c = pl.program_id(0)   # D-reduction split (v7x 2-TC)
    k = pl.program_id(2)   # D tile within the split (innermost, "arbitrary")

    @pl.when(k == 0)
    def _init():
        num_ref[...] = jnp.zeros_like(num_ref)
        pw_ref[...] = jnp.zeros_like(pw_ref)

    # Upcast to f32 on-chip; inputs stream in native dtype (bf16/int8/f32).
    pred = pred_ref[...].astype(jnp.float32)
    targ = targ_ref[...].astype(jnp.float32)

    if needs_mask:
        # Mask out-of-range lanes (ragged tail of D, and clamped duplicate
        # tiles from the 2-way reduction split) using the *intended* global
        # column index.  jnp.where selects an exact 0.0, so garbage (even
        # NaN/Inf) in the OOB region cannot leak into the sums.
        col_start = (c * k_per_split + k) * tile_d
        lane = lax.broadcasted_iota(jnp.int32, (1, tile_d), 1)
        valid = (col_start + lane) < d_valid
        pred = jnp.where(valid, pred, 0.0)
        targ = jnp.where(valid, targ, 0.0)

    prod = pred * targ
    num_ref[...] += jnp.sum(prod, axis=1, keepdims=True)

    if p == 2:
        u = pred + targ                      # den = sum(u^2) - 2*num (in XLA)
        pw_ref[...] += jnp.sum(u * u, axis=1, keepdims=True)
    elif p == 1:
        pw_ref[...] += jnp.sum(pred + targ, axis=1, keepdims=True)
    else:
        pw_ref[...] += jnp.sum(jnp.power(pred, p) + jnp.power(targ, p),
                               axis=1, keepdims=True)


def binary_dice_loss(predict, target, smooth=1.0, p=2):
    """Pallas implementation of BinaryDiceLoss.forward (mean reduction,
    binary_crossentropy=False — the module's default config)."""
    assert predict.shape[0] == target.shape[0], (
        "predict & target batch size don't match")
    n = predict.shape[0]
    pred2 = predict.reshape(n, -1)
    targ2 = target.reshape(n, -1)
    d = pred2.shape[1]

    # Stream native dtypes; only bools are widened to int8 (1 B/elem) so the
    # kernel sees a plain integer layout.  f32 upcast happens inside the
    # kernel (no wrapper-side HBM pass).
    if pred2.dtype == jnp.bool_:
        pred2 = pred2.astype(jnp.int8)
    if targ2.dtype == jnp.bool_:
        targ2 = targ2.astype(jnp.int8)

    # Sublane packing for tiny batches: split each row into `sub` sub-rows
    # (pure metadata reshape — no pad, no extra HBM traffic).
    sub = 1
    if n < 8:
        for cand in (8, 4, 2):
            if d % cand == 0:
                sub = cand
                break
    rows = n * sub
    d_sub = d // sub
    pred2 = pred2.reshape(rows, d_sub)
    targ2 = targ2.reshape(rows, d_sub)

    # Row tiling (second "parallel" axis) so large N never blows VMEM.
    row_tile = rows if rows <= _ROW_CAP else _ROW_CAP
    n_row_blocks = int(pl.cdiv(rows, row_tile))

    # D tiling, budgeted by the streamed dtype (~2 MiB actual per block).
    itemsize = max(pred2.dtype.itemsize, targ2.dtype.itemsize)
    if d_sub <= _LANE:
        tile_d = d_sub                                   # full dim (allowed)
    else:
        d_floor = (d_sub // _LANE) * _LANE               # keep tile <= d_sub
        by_budget = max(_LANE,
                        (_BLOCK_BUDGET // (row_tile * itemsize)) // _LANE * _LANE)
        tile_d = int(min(by_budget, d_floor))
    k_total = int(pl.cdiv(d_sub, tile_d))

    # v7x: split the D reduction across the 2 TensorCores ("parallel" axis);
    # serial (same work) on 1-TC chips.
    n_splits = 2 if k_total >= 2 else 1
    k_per_split = int(pl.cdiv(k_total, n_splits))
    grid = (n_splits, n_row_blocks, k_per_split)

    # Mask only needed when the tiled coverage overshoots the real D extent.
    needs_mask = (n_splits * k_per_split * tile_d) != d_sub

    # Clamp the column-block index so DMAs never start fully out of bounds;
    # the in-kernel mask (based on the *intended* index) zeroes duplicates.
    def in_index(c, r, k):
        return (r, jnp.minimum(c * k_per_split + k, k_total - 1))

    def out_index(c, r, k):
        return (c, r, 0)

    # Per-generation VMEM limit: ~half of physical, capped at 64 MiB.
    vmem_cap = 64 * 1024 * 1024
    try:
        vmem_cap = pltpu.get_tpu_info().vmem_capacity_bytes
    except Exception:
        pass
    vmem_limit = int(min(vmem_cap // 2, 64 * 1024 * 1024))

    kernel = functools.partial(
        _dice_kernel, p=int(p), tile_d=int(tile_d),
        k_per_split=int(k_per_split), d_valid=int(d_sub),
        needs_mask=bool(needs_mask))

    num_parts, pw_parts = pl.pallas_call(
        kernel,
        out_shape=(
            jax.ShapeDtypeStruct((n_splits, rows, 1), jnp.float32),
            jax.ShapeDtypeStruct((n_splits, rows, 1), jnp.float32),
        ),
        grid=grid,
        in_specs=[
            pl.BlockSpec((row_tile, tile_d), in_index),
            pl.BlockSpec((row_tile, tile_d), in_index),
        ],
        out_specs=(
            pl.BlockSpec((None, row_tile, 1), out_index),
            pl.BlockSpec((None, row_tile, 1), out_index),
        ),
        compiler_params=pltpu.CompilerParams(
            dimension_semantics=("parallel", "parallel", "arbitrary"),
            vmem_limit_bytes=vmem_limit,
        ),
    )(pred2, targ2)

    # Tiny finalize in XLA: combine splits / sub-rows, smooth, divide, mean.
    num = jnp.sum(num_parts[..., 0], axis=0)   # (rows,)
    pw = jnp.sum(pw_parts[..., 0], axis=0)     # (rows,)
    if sub > 1:
        num = num.reshape(n, sub).sum(axis=1)
        pw = pw.reshape(n, sub).sum(axis=1)
    if p == 2:
        den = pw - 2.0 * num                   # sum(p^2 + t^2)
    else:
        den = pw
    num = num + smooth
    den = den + smooth
    return jnp.mean(1.0 - num / den)


def _reference(predict, target, smooth=1.0, p=2):
    n = predict.shape[0]
    pr = predict.reshape(n, -1).astype(jnp.float32)
    tg = target.reshape(n, -1).astype(jnp.float32)
    num = jnp.sum(pr * tg, axis=1) + smooth
    den = jnp.sum(pr ** p + tg ** p, axis=1) + smooth
    return jnp.mean(1.0 - num / den)


if __name__ == "__main__":
    key = jax.random.PRNGKey(0)
    k1, k2, k3, k4 = jax.random.split(key, 4)

    # Primary config: [N, C, H, W] probability map vs. binary mask (bf16
    # streaming + in-kernel f32 upcast).
    shape = (2, 4, 16, 16)
    predict = jax.nn.sigmoid(
        jax.random.normal(k1, shape, dtype=jnp.float32)).astype(jnp.bfloat16)
    target = (jax.random.uniform(k2, shape) > 0.5).astype(jnp.bfloat16)

    loss = binary_dice_loss(predict, target, smooth=1.0, p=2)
    jax.block_until_ready(loss)
    ref = _reference(predict, target, smooth=1.0, p=2)
    assert jnp.allclose(loss, ref, atol=1e-5, rtol=1e-5), (loss, ref)

    # Ragged / multi-tile config: exercises the in-kernel tail mask, the
    # 2-way reduction split and mixed streamed dtypes (f32 predict, bf16 mask).
    shape2 = (2, 3, 20, 20)
    predict2 = jax.nn.sigmoid(jax.random.normal(k3, shape2, dtype=jnp.float32))
    target2 = (jax.random.uniform(k4, shape2) > 0.5).astype(jnp.bfloat16)

    loss2 = binary_dice_loss(predict2, target2, smooth=1.0, p=2)
    jax.block_until_ready(loss2)
    ref2 = _reference(predict2, target2, smooth=1.0, p=2)
    assert jnp.allclose(loss2, ref2, atol=1e-5, rtol=1e-5), (loss2, ref2)

    print("KERNEL_OK")
</pallas_src>

<mosaic_0001>
module attributes {stable_mosaic.version = 11 : i64} {
  func.func @_dice_kernel(%arg0: i32, %arg1: i32, %arg2: i32, %arg3: memref<16x128xbf16, #tpu.memory_space<vmem>>, %arg4: memref<16x128xbf16, #tpu.memory_space<vmem>>, %arg5: memref<1x16x1xf32, #tpu.memory_space<vmem>>, %arg6: memref<1x16x1xf32, #tpu.memory_space<vmem>>) attributes {dimension_semantics = [#tpu.dimension_semantics<parallel>, #tpu.dimension_semantics<parallel>, #tpu.dimension_semantics<arbitrary>], iteration_bounds = array<i64: 1, 1, 1>, scalar_prefetch = 0 : i64, scratch_operands = 0 : i64, tpu.core_type = #tpu.core_type<tc>, window_params = [{transform_indices = @transform_0, window_bounds = array<i64: 16, 128>}, {transform_indices = @transform_1, window_bounds = array<i64: 16, 128>}, {transform_indices = @transform_2, window_bounds = array<i64: 1, 16, 1>}, {transform_indices = @transform_3, window_bounds = array<i64: 1, 16, 1>}]} {
    %c0_i32 = arith.constant 0 : i32
    %0 = arith.cmpi eq, %arg2, %c0_i32 : i32
    %1 = arith.extui %0 : i1 to i32
    %c0_i32_0 = arith.constant 0 : i32
    %2 = arith.cmpi ne, %1, %c0_i32_0 : i32
    scf.if %2 {
      %cst_17 = arith.constant 0.000000e+00 : f32
      %26 = vector.broadcast %cst_17 : f32 to vector<16x1xf32>
      %c0_18 = arith.constant 0 : index
      %c0_19 = arith.constant 0 : index
      %c0_20 = arith.constant 0 : index
      %27 = vector.load %arg5[%c0_18, %c0_19, %c0_20] : memref<1x16x1xf32, #tpu.memory_space<vmem>>, vector<1x16x1xf32>
      %28 = vector.shape_cast %27 : vector<1x16x1xf32> to vector<16x1xf32>
      %29 = vector.shape_cast %26 : vector<16x1xf32> to vector<1x16x1xf32>
      tpu.vector_store %arg5[%c0_18, %c0_19, %c0_20], %29 {strides = array<i32>} : memref<1x16x1xf32, #tpu.memory_space<vmem>>, vector<1x16x1xf32>,
      %cst_21 = arith.constant 0.000000e+00 : f32
      %30 = vector.broadcast %cst_21 : f32 to vector<16x1xf32>
      %c0_22 = arith.constant 0 : index
      %c0_23 = arith.constant 0 : index
      %c0_24 = arith.constant 0 : index
      %31 = vector.load %arg6[%c0_22, %c0_23, %c0_24] : memref<1x16x1xf32, #tpu.memory_space<vmem>>, vector<1x16x1xf32>
      %32 = vector.shape_cast %31 : vector<1x16x1xf32> to vector<16x1xf32>
      %33 = vector.shape_cast %30 : vector<16x1xf32> to vector<1x16x1xf32>
      tpu.vector_store %arg6[%c0_22, %c0_23, %c0_24], %33 {strides = array<i32>} : memref<1x16x1xf32, #tpu.memory_space<vmem>>, vector<1x16x1xf32>,
    } else {
    }
    %c0 = arith.constant 0 : index
    %c0_1 = arith.constant 0 : index
    %3 = vector.load %arg3[%c0, %c0_1] : memref<16x128xbf16, #tpu.memory_space<vmem>>, vector<16x128xbf16>
    %4 = arith.extf %3 : vector<16x128xbf16> to vector<16x128xf32>
    %c0_2 = arith.constant 0 : index
    %c0_3 = arith.constant 0 : index
    %5 = vector.load %arg4[%c0_2, %c0_3] : memref<16x128xbf16, #tpu.memory_space<vmem>>, vector<16x128xbf16>
    %6 = arith.extf %5 : vector<16x128xbf16> to vector<16x128xf32>
    %7 = arith.mulf %4, %6 : vector<16x128xf32>
    %c0_4 = arith.constant 0 : index
    %c0_5 = arith.constant 0 : index
    %c0_6 = arith.constant 0 : index
    %8 = vector.load %arg5[%c0_4, %c0_5, %c0_6] : memref<1x16x1xf32, #tpu.memory_space<vmem>>, vector<1x16x1xf32>
    %9 = vector.shape_cast %8 : vector<1x16x1xf32> to vector<16x1xf32>
    %cst = arith.constant dense<0.000000e+00> : vector<16xf32>
    %10 = vector.multi_reduction <add>, %7, %cst [1] : vector<16x128xf32> to vector<16xf32>
    %11 = vector.shape_cast %10 : vector<16xf32> to vector<16x1xf32>
    %12 = arith.addf %9, %11 : vector<16x1xf32>
    %c0_7 = arith.constant 0 : index
    %c0_8 = arith.constant 0 : index
    %c0_9 = arith.constant 0 : index
    %13 = vector.load %arg5[%c0_7, %c0_8, %c0_9] : memref<1x16x1xf32, #tpu.memory_space<vmem>>, vector<1x16x1xf32>
    %14 = vector.shape_cast %13 : vector<1x16x1xf32> to vector<16x1xf32>
    %15 = vector.shape_cast %12 : vector<16x1xf32> to vector<1x16x1xf32>
    tpu.vector_store %arg5[%c0_7, %c0_8, %c0_9], %15 {strides = array<i32>} : memref<1x16x1xf32, #tpu.memory_space<vmem>>, vector<1x16x1xf32>,
    %16 = arith.addf %4, %6 : vector<16x128xf32>
    %c0_10 = arith.constant 0 : index
    %c0_11 = arith.constant 0 : index
    %c0_12 = arith.constant 0 : index
    %17 = vector.load %arg6[%c0_10, %c0_11, %c0_12] : memref<1x16x1xf32, #tpu.memory_space<vmem>>, vector<1x16x1xf32>
    %18 = vector.shape_cast %17 : vector<1x16x1xf32> to vector<16x1xf32>
    %19 = arith.mulf %16, %16 : vector<16x128xf32>
    %cst_13 = arith.constant dense<0.000000e+00> : vector<16xf32>
    %20 = vector.multi_reduction <add>, %19, %cst_13 [1] : vector<16x128xf32> to vector<16xf32>
    %21 = vector.shape_cast %20 : vector<16xf32> to vector<16x1xf32>
    %22 = arith.addf %18, %21 : vector<16x1xf32>
    %c0_14 = arith.constant 0 : index
    %c0_15 = arith.constant 0 : index
    %c0_16 = arith.constant 0 : index
    %23 = vector.load %arg6[%c0_14, %c0_15, %c0_16] : memref<1x16x1xf32, #tpu.memory_space<vmem>>, vector<1x16x1xf32>
    %24 = vector.shape_cast %23 : vector<1x16x1xf32> to vector<16x1xf32>
    %25 = vector.shape_cast %22 : vector<16x1xf32> to vector<1x16x1xf32>
    tpu.vector_store %arg6[%c0_14, %c0_15, %c0_16], %25 {strides = array<i32>} : memref<1x16x1xf32, #tpu.memory_space<vmem>>, vector<1x16x1xf32>,
    return
  }
  func.func @transform_0(%arg0: i32, %arg1: i32, %arg2: i32) -> (i32, i32) {
    %c1_i32 = arith.constant 1 : i32
    %0 = arith.muli %arg0, %c1_i32 : i32
    %1 = arith.addi %0, %arg2 : i32
    %c0_i32 = arith.constant 0 : i32
    %2 = arith.minsi %1, %c0_i32 : i32
    %c0_i32_0 = arith.constant 0 : i32
    return %arg1, %2 : i32, i32
  }
  func.func @transform_1(%arg0: i32, %arg1: i32, %arg2: i32) -> (i32, i32) {
    %c1_i32 = arith.constant 1 : i32
    %0 = arith.muli %arg0, %c1_i32 : i32
    %1 = arith.addi %0, %arg2 : i32
    %c0_i32 = arith.constant 0 : i32
    %2 = arith.minsi %1, %c0_i32 : i32
    %c0_i32_0 = arith.constant 0 : i32
    return %arg1, %2 : i32, i32
  }
  func.func @transform_2(%arg0: i32, %arg1: i32, %arg2: i32) -> (i32, i32, i32) {
    %c0_i32 = arith.constant 0 : i32
    %c0_i32_0 = arith.constant 0 : i32
    return %arg0, %arg1, %c0_i32 : i32, i32, i32
  }
  func.func @transform_3(%arg0: i32, %arg1: i32, %arg2: i32) -> (i32, i32, i32) {
    %c0_i32 = arith.constant 0 : i32
    %c0_i32_0 = arith.constant 0 : i32
    return %arg0, %arg1, %c0_i32 : i32, i32, i32
  }
}

</mosaic_0001>

<bundles_post_ra>
// kernel: tpu_custom_call.1
= control target key start
LH: loop header
LB: loop body
LE: loop exit
PB: predicated region body
PF: predicated region fallthrough
CT: control target
= control target key end

     0   :  { %9 = vsyncpa [#allocation3], 0  ;;  %s247_s0 = inlined_call_operand.hbm [shape: bf16[16,128], index: 0, kind: input, shape index: {}]   ;;  %s248_s1 = inlined_call_operand.hbm [shape: bf16[16,128], index: 1, kind: input, shape index: {}]   ;;  %s249_s2 = inlined_call_operand.vmem [shape: f32[1,16,1], index: 2, kind: output, shape index: {0}]   ;;  %s250_s3 = inlined_call_operand.vmem [shape: f32[1,16,1], index: 3, kind: output, shape index: {1}]  }
   0x1   :  { %10 = vsyncpa [#allocation5], 0  ;;  %s172_s12 = smov [#allocation2]  }
   0x2   :  { %s21_s13 = sshll.u32 %s172_s12, 4  ;;  %s22_s13 = int_to_ptr.vmem [resolvable:$true] %s21_s13 }
   0x3   :  { %s136_s14 = scalar_lea.vmem %s22_s13, 128  ;;  %p141_p1 = scmp.lt.s32.totalorder %s22_s13, %s22_s13 }
   0x4   :  { %p137_p0 = scmp.ne.s32.totalorder %s22_s13, %s136_s14  ;;  %p142_p2 = scmp.lt.s32.totalorder %s136_s14, %s136_s14 }
   0x6   :  { %p143_p3 = por %p142_p2, %p141_p1 }
   0x8   :  { %p144_p4 = pnand %p143_p3, %p137_p0 }
   0xa   :  { %147 = shalt.err (!%p144_p4)
}
   0xb   :  { %s173_s15 = smov 64   ;;  %s174_s16 = smov 4  }
   0xc   :  { %27 = dma.hbm_to_vmem [thread:$0]  %s247_s0, 128, %s22_s13, [#allocation3], %s173_s15, %s173_s15, %s174_s16  }
   0xd   :  { %s175_s19 = smov [#allocation4]  }
   0xe   :  { %s38_s20 = sshll.u32 %s175_s19, 4  ;;  %s39_s20 = int_to_ptr.vmem [resolvable:$true] %s38_s20 }
   0xf   :  { %s156_s21 = scalar_lea.vmem %s39_s20, 128  ;;  %p161_p6 = scmp.lt.s32.totalorder %s39_s20, %s39_s20 }
  0x10   :  { %p157_p5 = scmp.ne.s32.totalorder %s39_s20, %s156_s21  ;;  %p162_p7 = scmp.lt.s32.totalorder %s156_s21, %s156_s21 }
  0x12   :  { %p163_p8 = por %p162_p7, %p161_p6 }
  0x14   :  { %p164_p9 = pnand %p163_p8, %p157_p5 }
  0x16   :  { %167 = shalt.err (!%p164_p9)
}
  0x17   :  { %44 = dma.hbm_to_vmem [thread:$0]  %s248_s1, 128, %s39_s20, [#allocation5], %s173_s15, %s173_s15, %s174_s16  }
  0x18   :  { %168 = dma.done.wait [#allocation3], 128  }
  0x19   :  { %169 = vsyncadd [#allocation3], 4294967168 }
  0x1a   :  { %170 = dma.done.wait [#allocation5], 128  }
  0x1b   :  { %171 = vsyncadd [#allocation5], 4294967168  ;;  %vm61_vm0 = vcmask 7168   ;;  %v176_v0 = vmov 0.0   ;;  %v116_v1 = vld [vmem:[#allocation2] sm:$0xff]   ;;  %v120_v2 = vld [vmem:[#allocation4] sm:$0xff]  }
  0x1c   :  { %64 = vst.msk [vmem:[%s250_s3] sm:$0xff] %vm61_vm0, %v176_v0  ;;  %62 = vst.msk [vmem:[%s249_s2] sm:$0xff] %vm61_vm0, %v176_v0  ;;  %v117_v3 = vunpack.c.l.bf16 %v116_v1  ;;  %v121_v4 = vunpack.c.l.bf16 %v120_v2  ;;  %v118_v5 = vunpack.c.h.bf16 %v116_v1  ;;  %v122_v6 = vunpack.c.h.bf16 %v120_v2 }
  0x1d   :  { %63 = vst.msk [vmem:[%s249_s2 + $0x8] sm:$0xff] %vm61_vm0, %v176_v0  ;;  %65 = vst.msk [vmem:[%s250_s3 + $0x8] sm:$0xff] %vm61_vm0, %v176_v0 }
  0x1e   :  { %v87_v7 = vadd.f32 %v121_v4, %v117_v3  ;;  %v74_v8 = vmul.f32 %v121_v4, %v117_v3  ;;  %v88_v9 = vadd.f32 %v122_v6, %v118_v5  ;;  %v75_v11 = vmul.f32 %v122_v6, %v118_v5 }
  0x20   :  { %v91_v10 = vmul.f32 %v87_v7, %v87_v7  ;;  %78 = vadd.xlane.f32.xlu0 %v74_v8  ;;  %v92_v12 = vmul.f32 %v88_v9, %v88_v9 }
  0x22   :  { %93 = vadd.xlane.f32.xlu1 %v91_v10 }
  0x23   :  { %v76_v13 = vld [vmem:[%s249_s2] sm:$0xff] }
  0x24   :  { %80 = vadd.xlane.f32.xlu0 %v75_v11  ;;  %v89_v14 = vld [vmem:[%s250_s3] sm:$0xff]  ;;  %v77_v18 = vld [vmem:[%s249_s2 + $0x8] sm:$0xff] }
  0x25   :  { %v90_v20 = vld [vmem:[%s250_s3 + $0x8] sm:$0xff] }
  0x26   :  { %95 = vadd.xlane.f32.xlu1 %v92_v12 }
  0xa9   :  { %v79_v15 = vpop.xlane.xlu0 %78 }
  0xaa   :  { %v82_v16 = vadd.f32 %v79_v15, %v76_v13 }
  0xab   :  { %v94_v17 = vpop.xlane.xlu1 %93 }
  0xac   :  { %v97_v19 = vadd.f32 %v94_v17, %v89_v14  ;;  %85 = vst.msk [vmem:[%s249_s2] sm:$0xff] %vm61_vm0, %v82_v16 }
  0xad   :  { %v81_v21 = vpop.xlane.xlu0 %80 }
  0xae   :  { %99 = vst.msk [vmem:[%s250_s3] sm:$0xff] %vm61_vm0, %v97_v19  ;;  %v83_v22 = vadd.f32 %v81_v21, %v77_v18 }
  0xaf   :  { %v96_v23 = vpop.xlane.xlu1 %95 }
  0xb0   :  { %v98_v24 = vadd.f32 %v96_v23, %v90_v20  ;;  %86 = vst.msk [vmem:[%s249_s2 + $0x8] sm:$0xff] %vm61_vm0, %v83_v22 }
  0xb2   :  { %100 = vst.msk [vmem:[%s250_s3 + $0x8] sm:$0xff] %vm61_vm0, %v98_v24 }
  0xb3   :  { %109 = vsyncpa [#allocation3], 1 }
  0xb4   :  { %110 = vsyncpa [#allocation5], 1 }

</bundles_post_ra>
